<compile_context>
chip_gen: v7x
topology: tpu7x:2x2x1
jax: 0.10.0
libtpu: 0.0.40
codegen_flags: <defaults>
</compile_context>

<pallas_src>
import functools

import jax
import jax.numpy as jnp
import numpy as np
from jax.experimental import pallas as pl
from jax.experimental.pallas import tpu as pltpu

_LANE = 128
_SUB = 8
_PAD_LOGIT = -100.0   # sigmoid(-100) == 0 exactly in f32  ->  padded loss == 0


def _focal_loss_kernel(x_ref, t_ref, o_ref, acc_ref, *, alpha, gamma):
    step = pl.program_id(1)

    @pl.when(step == 0)
    def _():
        acc_ref[...] = jnp.zeros_like(acc_ref)

    x = x_ref[...].astype(jnp.float32)
    t = t_ref[...].astype(jnp.float32)

    # sigmoid via tanh: one EUP transcendental, stable at both tails.
    p = 0.5 * (jnp.tanh(0.5 * x) + 1.0)
    # Stable BCE with logits: max(x,0) - x*t + softplus(-|x|),
    # where softplus(-|x|) == -log(sigmoid(|x|)) == -log(max(p, 1-p)).
    bce = jnp.maximum(x, 0.0) - x * t - jnp.log(jnp.maximum(p, 1.0 - p))

    one_minus_pt = p + t - 2.0 * t * p                    # == 1 - p_t
    alpha_t = (1.0 - alpha) + (2.0 * alpha - 1.0) * t     # == t*a + (1-t)*(1-a)

    # (1 - p_t) ** gamma: gamma is a trace-time constant; integer exponents stay
    # on the VPU (plain multiplies), non-integer falls back to EUP exp/log.
    if float(gamma).is_integer():
        g = int(gamma)
        focal = jnp.ones_like(one_minus_pt) if g == 0 else one_minus_pt
        for _ in range(g - 1):
            focal = focal * one_minus_pt
    else:
        focal = jnp.exp(gamma * jnp.log(jnp.maximum(one_minus_pt, 1e-30)))

    loss = alpha_t * focal * bce

    # (block_rows,128) -> (block_rows//8, 8, 128) keeps each (8,128) vreg intact;
    # the leading-axis sum is plain VALU adds into the tiny resident accumulator
    # (no full-tile load/store per step).
    acc_ref[...] += jnp.sum(loss.reshape(-1, _SUB, _LANE), axis=0)

    @pl.when(step == pl.num_programs(1) - 1)
    def _():
        o_ref[...] = acc_ref[...][None]


def _round_up(a, b):
    return -(-a // b) * b


def focal_loss(inputs, targets, *, alpha=0.25, gamma=3.0, reduction='mean'):
    """Pallas TPU focal loss; matches the PyTorch FocalLoss.forward semantics."""
    x = inputs.reshape(-1)
    t = targets.reshape(-1)
    n = x.shape[0]

    rows = _round_up(-(-n // _LANE), _SUB)          # lane-dense rows, mult of 8
    block_rows = min(1024, rows)                    # (block_rows, 128) VMEM tile
    num_blocks = -(-rows // block_rows)
    num_par = 2 if num_blocks >= 2 else 1           # let v7x use both TensorCores
    num_blocks = _round_up(num_blocks, num_par)
    rows_p = num_blocks * block_rows
    steps = num_blocks // num_par
    total = rows_p * _LANE

    if total != n:
        # Pad logits with a large-negative value and targets with 0: padded
        # elements give exactly 0 loss, so the kernel needs no masking.
        x = jnp.pad(x, (0, total - n), constant_values=_PAD_LOGIT)
        t = jnp.pad(t, (0, total - n), constant_values=0)
    x2 = x.reshape(rows_p, _LANE)
    t2 = t.reshape(rows_p, _LANE)

    kernel = functools.partial(_focal_loss_kernel,
                               alpha=float(alpha), gamma=float(gamma))

    bytes_in = total * (x2.dtype.itemsize + t2.dtype.itemsize)
    cost = pl.CostEstimate(
        flops=20 * total,
        transcendentals=2 * total,
        bytes_accessed=bytes_in + num_par * _SUB * _LANE * 4,
    )

    partials = pl.pallas_call(
        kernel,
        out_shape=jax.ShapeDtypeStruct((num_par, _SUB, _LANE), jnp.float32),
        grid_spec=pltpu.PrefetchScalarGridSpec(
            num_scalar_prefetch=0,
            grid=(num_par, steps),
            in_specs=[
                pl.BlockSpec((block_rows, _LANE), lambda c, i: (c * steps + i, 0)),
                pl.BlockSpec((block_rows, _LANE), lambda c, i: (c * steps + i, 0)),
            ],
            out_specs=pl.BlockSpec((1, _SUB, _LANE), lambda c, i: (c, 0, 0)),
            scratch_shapes=[pltpu.VMEM((_SUB, _LANE), jnp.float32)],
        ),
        compiler_params=pltpu.CompilerParams(
            dimension_semantics=("parallel", "arbitrary"),
        ),
        cost_estimate=cost,
    )(x2, t2)

    total_loss = jnp.sum(partials)                  # tiny (num_par,8,128) reduce
    if reduction == 'mean':
        total_loss = total_loss / jnp.float32(n)
    # TODO(synk): reduction='none' (elementwise output) not supported; the PyTorch
    # module itself only ever returns mean() or sum().
    return total_loss


def _focal_loss_ref(inputs, targets, alpha=0.25, gamma=3.0, reduction='mean'):
    x = inputs.astype(jnp.float32)
    t = targets.astype(jnp.float32)
    bce = jnp.maximum(x, 0.0) - x * t + jnp.log1p(jnp.exp(-jnp.abs(x)))
    p = jax.nn.sigmoid(x)
    p_t = t * p + (1 - t) * (1 - p)
    alpha_t = t * alpha + (1 - t) * (1 - alpha)
    loss = alpha_t * (1 - p_t) ** gamma * bce
    return jnp.mean(loss) if reduction == 'mean' else jnp.sum(loss)


if __name__ == "__main__":
    key = jax.random.PRNGKey(0)
    k_x, k_t = jax.random.split(key)
    # Small shapes consistent with the module (elementwise logits/targets).
    inputs = jax.random.normal(k_x, (2, 4, 16, 16), jnp.float32)
    targets = jax.random.bernoulli(k_t, 0.3, (2, 4, 16, 16)).astype(jnp.float32)

    loss_fn = jax.jit(functools.partial(focal_loss, alpha=0.25, gamma=3.0,
                                        reduction='mean'))
    out = loss_fn(inputs, targets)
    jax.block_until_ready(out)

    ref = _focal_loss_ref(inputs, targets, alpha=0.25, gamma=3.0, reduction='mean')
    np.testing.assert_allclose(np.asarray(out), np.asarray(ref), rtol=1e-4, atol=1e-5)
    assert out.shape == () and out.dtype == jnp.float32
    print("KERNEL_OK")
</pallas_src>

<mosaic_0001>
module attributes {stable_mosaic.version = 11 : i64} {
  func.func @_focal_loss_kernel(%arg0: i32, %arg1: i32, %arg2: memref<16x128xf32, #tpu.memory_space<vmem>>, %arg3: memref<16x128xf32, #tpu.memory_space<vmem>>, %arg4: memref<1x8x128xf32, #tpu.memory_space<vmem>>, %arg5: memref<8x128xf32, #tpu.memory_space<vmem>>) attributes {dimension_semantics = [#tpu.dimension_semantics<parallel>, #tpu.dimension_semantics<arbitrary>], iteration_bounds = array<i64: 1, 1>, scalar_prefetch = 0 : i64, scratch_operands = 1 : i64, tpu.core_type = #tpu.core_type<tc>, window_params = [{transform_indices = @transform_0, window_bounds = array<i64: 16, 128>}, {transform_indices = @transform_1, window_bounds = array<i64: 16, 128>}, {transform_indices = @transform_2, window_bounds = array<i64: 1, 8, 128>}]} {
    %c0_i32 = arith.constant 0 : i32
    %0 = arith.cmpi eq, %arg1, %c0_i32 : i32
    %1 = arith.extui %0 : i1 to i32
    %c0_i32_0 = arith.constant 0 : i32
    %2 = arith.cmpi ne, %1, %c0_i32_0 : i32
    scf.if %2 {
      %cst_18 = arith.constant 0.000000e+00 : f32
      %42 = vector.broadcast %cst_18 : f32 to vector<8x128xf32>
      %c0_19 = arith.constant 0 : index
      %c0_20 = arith.constant 0 : index
      %43 = vector.load %arg5[%c0_19, %c0_20] : memref<8x128xf32, #tpu.memory_space<vmem>>, vector<8x128xf32>
      tpu.vector_store %arg5[%c0_19, %c0_20], %42 {strides = array<i32>} : memref<8x128xf32, #tpu.memory_space<vmem>>, vector<8x128xf32>,
    } else {
    }
    %c0 = arith.constant 0 : index
    %c0_1 = arith.constant 0 : index
    %3 = vector.load %arg2[%c0, %c0_1] : memref<16x128xf32, #tpu.memory_space<vmem>>, vector<16x128xf32>
    %c0_2 = arith.constant 0 : index
    %c0_3 = arith.constant 0 : index
    %4 = vector.load %arg3[%c0_2, %c0_3] : memref<16x128xf32, #tpu.memory_space<vmem>>, vector<16x128xf32>
    %cst = arith.constant 5.000000e-01 : f32
    %5 = vector.broadcast %cst : f32 to vector<16x128xf32>
    %6 = arith.mulf %5, %3 : vector<16x128xf32>
    %7 = math.tanh %6 : vector<16x128xf32>
    %cst_4 = arith.constant 1.000000e+00 : f32
    %8 = vector.broadcast %cst_4 : f32 to vector<16x128xf32>
    %9 = arith.addf %7, %8 : vector<16x128xf32>
    %cst_5 = arith.constant 5.000000e-01 : f32
    %10 = vector.broadcast %cst_5 : f32 to vector<16x128xf32>
    %11 = arith.mulf %10, %9 : vector<16x128xf32>
    %cst_6 = arith.constant 0.000000e+00 : f32
    %12 = vector.broadcast %cst_6 : f32 to vector<16x128xf32>
    %13 = arith.maximumf %3, %12 : vector<16x128xf32>
    %14 = arith.mulf %3, %4 : vector<16x128xf32>
    %15 = arith.subf %13, %14 : vector<16x128xf32>
    %cst_7 = arith.constant 1.000000e+00 : f32
    %16 = vector.broadcast %cst_7 : f32 to vector<16x128xf32>
    %17 = arith.subf %16, %11 : vector<16x128xf32>
    %18 = arith.maximumf %11, %17 : vector<16x128xf32>
    %19 = math.log %18 : vector<16x128xf32>
    %20 = arith.subf %15, %19 : vector<16x128xf32>
    %21 = arith.addf %11, %4 : vector<16x128xf32>
    %cst_8 = arith.constant 2.000000e+00 : f32
    %22 = vector.broadcast %cst_8 : f32 to vector<16x128xf32>
    %23 = arith.mulf %22, %4 : vector<16x128xf32>
    %24 = arith.mulf %23, %11 : vector<16x128xf32>
    %25 = arith.subf %21, %24 : vector<16x128xf32>
    %cst_9 = arith.constant -5.000000e-01 : f32
    %26 = vector.broadcast %cst_9 : f32 to vector<16x128xf32>
    %27 = arith.mulf %26, %4 : vector<16x128xf32>
    %cst_10 = arith.constant 7.500000e-01 : f32
    %28 = vector.broadcast %cst_10 : f32 to vector<16x128xf32>
    %29 = arith.addf %28, %27 : vector<16x128xf32>
    %30 = arith.mulf %25, %25 : vector<16x128xf32>
    %31 = arith.mulf %30, %25 : vector<16x128xf32>
    %32 = arith.mulf %29, %31 : vector<16x128xf32>
    %33 = arith.mulf %32, %20 : vector<16x128xf32>
    %c0_11 = arith.constant 0 : index
    %c0_12 = arith.constant 0 : index
    %34 = vector.load %arg5[%c0_11, %c0_12] : memref<8x128xf32, #tpu.memory_space<vmem>>, vector<8x128xf32>
    %35 = vector.shape_cast %33 : vector<16x128xf32> to vector<2x8x128xf32>
    %cst_13 = arith.constant dense<0.000000e+00> : vector<8x128xf32>
    %36 = vector.multi_reduction <add>, %35, %cst_13 [0] : vector<2x8x128xf32> to vector<8x128xf32>
    %37 = arith.addf %34, %36 : vector<8x128xf32>
    %c0_14 = arith.constant 0 : index
    %c0_15 = arith.constant 0 : index
    %38 = vector.load %arg5[%c0_14, %c0_15] : memref<8x128xf32, #tpu.memory_space<vmem>>, vector<8x128xf32>
    tpu.vector_store %arg5[%c0_14, %c0_15], %37 {strides = array<i32>} : memref<8x128xf32, #tpu.memory_space<vmem>>, vector<8x128xf32>,
    %c0_i32_16 = arith.constant 0 : i32
    %39 = arith.cmpi eq, %arg1, %c0_i32_16 : i32
    %40 = arith.extui %39 : i1 to i32
    %c0_i32_17 = arith.constant 0 : i32
    %41 = arith.cmpi ne, %40, %c0_i32_17 : i32
    scf.if %41 {
      %c0_18 = arith.constant 0 : index
      %c0_19 = arith.constant 0 : index
      %42 = vector.load %arg5[%c0_18, %c0_19] : memref<8x128xf32, #tpu.memory_space<vmem>>, vector<8x128xf32>
      %43 = vector.shape_cast %42 : vector<8x128xf32> to vector<1x8x128xf32>
      %c0_20 = arith.constant 0 : index
      %c0_21 = arith.constant 0 : index
      %c0_22 = arith.constant 0 : index
      %44 = vector.load %arg4[%c0_20, %c0_21, %c0_22] : memref<1x8x128xf32, #tpu.memory_space<vmem>>, vector<1x8x128xf32>
      tpu.vector_store %arg4[%c0_20, %c0_21, %c0_22], %43 {strides = array<i32>} : memref<1x8x128xf32, #tpu.memory_space<vmem>>, vector<1x8x128xf32>,
    } else {
    }
    return
  }
  func.func @transform_0(%arg0: i32, %arg1: i32) -> (i32, i32) {
    %c1_i32 = arith.constant 1 : i32
    %0 = arith.muli %arg0, %c1_i32 : i32
    %1 = arith.addi %0, %arg1 : i32
    %c0_i32 = arith.constant 0 : i32
    %c0_i32_0 = arith.constant 0 : i32
    return %1, %c0_i32 : i32, i32
  }
  func.func @transform_1(%arg0: i32, %arg1: i32) -> (i32, i32) {
    %c1_i32 = arith.constant 1 : i32
    %0 = arith.muli %arg0, %c1_i32 : i32
    %1 = arith.addi %0, %arg1 : i32
    %c0_i32 = arith.constant 0 : i32
    %c0_i32_0 = arith.constant 0 : i32
    return %1, %c0_i32 : i32, i32
  }
  func.func @transform_2(%arg0: i32, %arg1: i32) -> (i32, i32, i32) {
    %c0_i32 = arith.constant 0 : i32
    %c0_i32_0 = arith.constant 0 : i32
    %c0_i32_1 = arith.constant 0 : i32
    return %arg0, %c0_i32, %c0_i32_0 : i32, i32, i32
  }
}

</mosaic_0001>

<bundles_post_ra>
// kernel: focal_loss.1
= control target key start
LH: loop header
LB: loop body
LE: loop exit
PB: predicated region body
PF: predicated region fallthrough
CT: control target
= control target key end

     0   :  { %s171_s0 = inlined_call_operand.vmem [shape: f32[16,128], index: 0, kind: input, shape index: {}]   ;;  %s172_s1 = inlined_call_operand.vmem [shape: f32[16,128], index: 1, kind: input, shape index: {}]   ;;  %s173_s2 = inlined_call_operand.vmem [shape: f32[1,8,128], index: 2, kind: output, shape index: {}]  }
   0x1   :  { %v60_v0 = vld [vmem:[%s171_s0] sm:$0xff]  ;;  %v61_v1 = vld [vmem:[%s171_s0 + $0x8] sm:$0xff] }
   0x2   :  { %v64_v2 = vmul.f32 0.5, %v60_v0  ;;  %v65_v3 = vmul.f32 0.5, %v61_v1  ;;  %v62_v4 = vld [vmem:[%s172_s1] sm:$0xff]  ;;  %v63_v5 = vld [vmem:[%s172_s1 + $0x8] sm:$0xff]  ;;  %v72_v28 = vmax.f32 %v60_v0, 0.0  ;;  %v73_v30 = vmax.f32 %v61_v1, 0.0 }
   0x3   :  { %v90_v9 = vmul.f32 2.0, %v62_v4  ;;  %v91_v11 = vmul.f32 2.0, %v63_v5  ;;  %v96_v24 = vmul.f32 -0.5, %v62_v4  ;;  %v97_v26 = vmul.f32 -0.5, %v63_v5 }
   0x4   :  { %133 = vtanh.f32 %v64_v2  ;;  %v74_v29 = vmul.f32 %v62_v4, %v60_v0  ;;  %v75_v31 = vmul.f32 %v63_v5, %v61_v1 }
   0x5   :  { %135 = vtanh.f32 %v65_v3  ;;  %v98_v32 = vadd.f32 0.75, %v96_v24  ;;  %v99_v34 = vadd.f32 0.75, %v97_v26 }
   0x6   :  { %v76_v36 = vsub.f32 %v72_v28, %v74_v29  ;;  %v77_v38 = vsub.f32 %v73_v30, %v75_v31 }
   0xe   :  { %v134_v6 = vpop.eup %133 }
   0xf   :  { %v136_v7 = vpop.eup %135  ;;  %v68_v8 = vadd.f32 1.0, %v134_v6 }
  0x10   :  { %v69_v10 = vadd.f32 1.0, %v136_v7 }
  0x11   :  { %v70_v12 = vmul.f32 0.5, %v68_v8 }
  0x12   :  { %v71_v13 = vmul.f32 0.5, %v69_v10 }
  0x13   :  { %v78_v14 = vsub.f32 1.0, %v70_v12  ;;  %v88_v15 = vadd.f32 %v70_v12, %v62_v4  ;;  %v92_v16 = vmul.f32 %v90_v9, %v70_v12 }
  0x14   :  { %v79_v17 = vsub.f32 1.0, %v71_v13  ;;  %v89_v18 = vadd.f32 %v71_v13, %v63_v5  ;;  %v93_v19 = vmul.f32 %v91_v11, %v71_v13 }
  0x15   :  { %v80_v20 = vmax.f32 %v70_v12, %v78_v14  ;;  %v94_v22 = vsub.f32 %v88_v15, %v92_v16 }
  0x16   :  { %v81_v21 = vmax.f32 %v71_v13, %v79_v17  ;;  %v95_v23 = vsub.f32 %v89_v18, %v93_v19 }
  0x17   :  { %137 = vlog2.f32 %v80_v20  ;;  %v100_v25 = vmul.f32 %v94_v22, %v94_v22 }
  0x18   :  { %139 = vlog2.f32 %v81_v21  ;;  %v101_v27 = vmul.f32 %v95_v23, %v95_v23 }
  0x19   :  { %v102_v33 = vmul.f32 %v100_v25, %v94_v22 }
  0x1a   :  { %v103_v35 = vmul.f32 %v101_v27, %v95_v23 }
  0x1b   :  { %v104_v41 = vmul.f32 %v102_v33, %v98_v32 }
  0x1c   :  { %v105_v43 = vmul.f32 %v103_v35, %v99_v34 }
  0x21   :  { %v138_v37 = vpop.eup %137 }
  0x22   :  { %v140_v39 = vpop.eup %139  ;;  %v83_v40 = vmul.f32 0.6931472, %v138_v37 }
  0x23   :  { %v85_v42 = vmul.f32 0.6931472, %v140_v39 }
  0x24   :  { %v86_v44 = vsub.f32 %v76_v36, %v83_v40 }
  0x25   :  { %v87_v45 = vsub.f32 %v77_v38, %v85_v42 }
  0x26   :  { %v106_v46 = vmul.f32 %v104_v41, %v86_v44 }
  0x27   :  { %v107_v47 = vmul.f32 %v105_v43, %v87_v45 }
  0x29   :  { %v109_v48 = vadd.f32 %v107_v47, %v106_v46 }
  0x2b   :  { %116 = vst [vmem:[%s173_s2] sm:$0xff] %v109_v48 }

</bundles_post_ra>
